<compile_context>
chip_gen: v7x
topology: tpu7x:2x2x1
jax: 0.10.0
libtpu: 0.0.40
codegen_flags: <defaults>
</compile_context>

<pallas_src>
import math
import functools

import jax
import jax.numpy as jnp
from jax.experimental import pallas as pl
from jax.experimental.pallas import tpu as pltpu


def make_pos_embedding(emb_size: int, maxlen: int = 5000) -> jnp.ndarray:
    """Deterministic sinusoidal table, identical to the torch __init__ math."""
    den = jnp.exp(-jnp.arange(0, emb_size, 2, dtype=jnp.float32)
                  * (math.log(10000.0) / emb_size))                   # (emb//2,)
    pos = jnp.arange(0, maxlen, dtype=jnp.float32).reshape(maxlen, 1)  # (maxlen,1)
    ang = pos * den                                                    # (maxlen, emb//2)
    pe = jnp.zeros((maxlen, emb_size), dtype=jnp.float32)
    pe = pe.at[:, 0::2].set(jnp.sin(ang))
    pe = pe.at[:, 1::2].set(jnp.cos(ang))
    return pe[:, None, :]                                              # (maxlen, 1, emb)


def _round_up(x: int, m: int) -> int:
    return ((x + m - 1) // m) * m


def _sublane_multiple(dtype) -> int:
    # f32 -> 8, bf16 -> 16, int8/fp8 -> 32 (packed sublanes)
    return max(8, 32 // jnp.dtype(dtype).itemsize)


@functools.lru_cache(maxsize=None)
def _vmem_limit_bytes() -> int:
    """Chip-aware scoped-VMEM limit: half of physical, capped at 64 MiB."""
    cap = None
    try:
        cap = getattr(pltpu.get_tpu_info(), "vmem_capacity_bytes", None)
    except Exception:
        cap = None
    if not cap:
        cap = 64 * 1024 * 1024          # conservative default (v7x physical)
    return int(min(cap // 2, 64 * 1024 * 1024))


def _pick_tile_s(seq_len: int, row_dbuf_bytes: int, x_row_bytes: int,
                 sub: int, budget: int) -> int:
    """Rows per folded (S, B*E) block.  Returns 0 if even `sub` rows overflow."""
    t = (budget // max(row_dbuf_bytes, 1)) // sub * sub
    if t < sub:
        return 0
    # keep each x stream <= ~16 MiB (roofline saturates well before this)
    t = min(t, max(sub, ((16 << 20) // max(x_row_bytes, 1)) // sub * sub))
    # never exceed the 8-padded sequence length
    t = min(t, _round_up(seq_len, 8))
    # Aim for >= 8 grid steps (>= 4 pipelined iterations per v7x TensorCore,
    # restores read-i+1 / write-i-1 overlap); per-step overhead ~0.35 us so it
    # is nearly free -- but never shrink below ~1 MiB of x per block, where
    # bigger blocks win (single-TC v5e/v6e keep their large tiles this way).
    rows_1mb = _round_up(max(1, pl.cdiv(1 << 20, max(x_row_bytes, 1))), sub)
    target8 = _round_up(max(1, pl.cdiv(seq_len, 8)), sub)
    target2 = _round_up(max(1, pl.cdiv(seq_len, 2)), sub)
    if target8 >= rows_1mb:
        t = min(t, target8)
    elif target2 >= rows_1mb:
        t = min(t, target2)
    return max(t, 8)


def _pick_tile_b(batch: int, emb: int, itemsize: int,
                 tile_s: int, budget: int) -> int:
    """Batch rows per 3-D fallback block (multiple of 8, or the full batch)."""
    per_sb = 5 * emb * itemsize     # dbuf x + dbuf out + broadcast intermediate
    per_s = 2 * emb * itemsize      # dbuf pos
    avail = budget // max(tile_s, 1) - per_s
    tb = max(1, avail // max(per_sb, 1))
    if batch <= 8 or tb >= batch:
        return batch
    # TODO(synk): if even (tile_s, 8, E) overflows (astronomical E), E itself
    # would need lane tiling (only legal when E % 128 == 0); clamp for now.
    return max(8, (tb // 8) * 8)


def _pe_add_kernel_2d(x_ref, pos_ref, o_ref, *, batch: int):
    # x_ref / o_ref: (tile_s, B*E) lane-dense folded activations
    # pos_ref:       (tile_s, E)   positional rows, already in activation dtype
    p = pos_ref[...]
    if batch > 1:
        # Broadcast across the folded batch copies.  This (tile_s, B*E)
        # intermediate IS counted in the VMEM budget (see _pick_tile_s caller).
        p = jnp.tile(p, (1, batch))
    o_ref[...] = x_ref[...] + p
    # TODO(synk): training-mode dropout could be fused here via
    # pltpu.prng_seed + pltpu.stateful_bernoulli; eval-mode forward is identity.


def _pe_add_kernel_3d(x_ref, pos_ref, o_ref):
    # Fallback for very wide B*E.
    # x_ref / o_ref: (tile_s, tile_b, E);  pos_ref: (tile_s, E)
    o_ref[...] = x_ref[...] + pos_ref[...][:, None, :]


def _positional_encoding_impl(token_embedding: jnp.ndarray,
                              pos_embedding: jnp.ndarray,
                              *, force_fallback: bool = False) -> jnp.ndarray:
    """token_embedding: (S, B, E); pos_embedding: (maxlen, 1, E) float table."""
    S, B, E = token_embedding.shape
    maxlen = pos_embedding.shape[0]
    dtype = token_embedding.dtype
    isz = jnp.dtype(dtype).itemsize
    sub = _sublane_multiple(dtype)

    vmem_limit = _vmem_limit_bytes()
    budget = (3 * vmem_limit) // 4          # leave headroom for Mosaic scratch

    # Slice to the rows actually used and cast ONCE to the activation dtype
    # (bf16 models pay bf16 bandwidth on the pos stream; no per-block cast).
    pos2d = pos_embedding.reshape(maxlen, E)[:S].astype(dtype)

    # ---- primary path: lane-dense (S, B*E) fold, tile over S ------------------
    # Per-row footprint at a block step (double-buffered x/out/pos + the
    # in-kernel broadcast intermediate):
    row_dbuf = isz * (4 * B * E + 2 * E + (B * E if B > 1 else 0))
    x_row = B * E * isz
    tile_s = 0 if force_fallback else _pick_tile_s(S, row_dbuf, x_row, sub, budget)

    if tile_s > 0:
        x2d = token_embedding.reshape(S, B * E)
        grid = (pl.cdiv(S, tile_s),)
        kernel = functools.partial(_pe_add_kernel_2d, batch=B)
        out2d = pl.pallas_call(
            kernel,
            out_shape=jax.ShapeDtypeStruct((S, B * E), dtype),
            grid_spec=pltpu.PrefetchScalarGridSpec(
                num_scalar_prefetch=0,
                grid=grid,
                in_specs=[
                    pl.BlockSpec((tile_s, B * E), lambda i: (i, 0)),
                    pl.BlockSpec((tile_s, E), lambda i: (i, 0)),
                ],
                out_specs=pl.BlockSpec((tile_s, B * E), lambda i: (i, 0)),
            ),
            input_output_aliases={0: 0},            # out reuses x's HBM buffer
            compiler_params=pltpu.CompilerParams(
                dimension_semantics=("parallel",),
                vmem_limit_bytes=vmem_limit,
            ),
        )(x2d, pos2d)
        return out2d.reshape(S, B, E)

    # ---- fallback: B*E too wide -> 3-D blocks with a batch grid axis ----------
    tile_s_fb = sub if S >= sub else _round_up(S, 8)
    tile_b = _pick_tile_b(B, E, isz, tile_s_fb, budget)
    grid = (pl.cdiv(S, tile_s_fb), pl.cdiv(B, tile_b))
    out = pl.pallas_call(
        _pe_add_kernel_3d,
        out_shape=jax.ShapeDtypeStruct((S, B, E), dtype),
        grid_spec=pltpu.PrefetchScalarGridSpec(
            num_scalar_prefetch=0,
            grid=grid,
            in_specs=[
                pl.BlockSpec((tile_s_fb, tile_b, E), lambda i, j: (i, j, 0)),
                pl.BlockSpec((tile_s_fb, E), lambda i, j: (i, 0)),
            ],
            out_specs=pl.BlockSpec((tile_s_fb, tile_b, E), lambda i, j: (i, j, 0)),
        ),
        input_output_aliases={0: 0},
        compiler_params=pltpu.CompilerParams(
            dimension_semantics=("parallel", "parallel"),
            vmem_limit_bytes=vmem_limit,
        ),
    )(token_embedding, pos2d)
    return out


# Donate x so input_output_aliases={0:0} is honored (no defensive HBM copy).
# Callers must not reuse the donated array after the call.
positional_encoding = jax.jit(_positional_encoding_impl, donate_argnums=(0,))
_positional_encoding_fallback = jax.jit(
    functools.partial(_positional_encoding_impl, force_fallback=True),
    donate_argnums=(0,))


if __name__ == "__main__":
    # Small shapes consistent with the module's forward: (seq, batch, emb)
    SEQ, BATCH, EMB = 8, 2, 32
    MAXLEN = 64  # synthetic buffer length (>= SEQ)

    key = jax.random.PRNGKey(0)
    x = jax.random.normal(key, (SEQ, BATCH, EMB), dtype=jnp.float32)
    pos_emb = make_pos_embedding(EMB, maxlen=MAXLEN)

    # References computed BEFORE kernel calls (x is donated to the kernel).
    ref = x + pos_emb[:SEQ]                                   # eval dropout == id
    x_bf16 = x.astype(jnp.bfloat16)
    ref_bf16 = (x_bf16 + pos_emb[:SEQ].astype(jnp.bfloat16)).astype(jnp.bfloat16)
    x_fb = jax.random.normal(key, (SEQ, BATCH, EMB), dtype=jnp.float32)  # same key

    # Primary (lane-dense folded) path, f32.
    out = jax.block_until_ready(positional_encoding(x, pos_emb))
    assert out.shape == (SEQ, BATCH, EMB)
    assert jnp.allclose(out, ref, atol=1e-6), "mismatch vs reference (f32)"

    # bf16 path (add runs in bf16; pos cast once in the wrapper).
    out_bf16 = jax.block_until_ready(positional_encoding(x_bf16, pos_emb))
    assert out_bf16.dtype == jnp.bfloat16
    assert jnp.allclose(out_bf16.astype(jnp.float32),
                        ref_bf16.astype(jnp.float32), atol=2e-2), "mismatch (bf16)"

    # Force the wide-B*E 3-D fallback path to make sure it also compiles/runs.
    out_fb = jax.block_until_ready(_positional_encoding_fallback(x_fb, pos_emb))
    assert jnp.allclose(out_fb, ref, atol=1e-6), "mismatch vs reference (fallback)"

    print("KERNEL_OK")
</pallas_src>

<mosaic_0001>
module attributes {stable_mosaic.version = 11 : i64} {
  func.func @_pe_add_kernel_2d(%arg0: i32, %arg1: memref<8x64xf32, #tpu.memory_space<vmem>>, %arg2: memref<8x32xf32, #tpu.memory_space<vmem>>, %arg3: memref<8x64xf32, #tpu.memory_space<vmem>>) attributes {dimension_semantics = [#tpu.dimension_semantics<parallel>], iteration_bounds = array<i64: 1>, scalar_prefetch = 0 : i64, scratch_operands = 0 : i64, tpu.core_type = #tpu.core_type<tc>, window_params = [{transform_indices = @transform_0, window_bounds = array<i64: 8, 64>}, {transform_indices = @transform_1, window_bounds = array<i64: 8, 32>}, {transform_indices = @transform_2, window_bounds = array<i64: 8, 64>}]} {
    %c0 = arith.constant 0 : index
    %c0_0 = arith.constant 0 : index
    %0 = vector.load %arg2[%c0, %c0_0] : memref<8x32xf32, #tpu.memory_space<vmem>>, vector<8x32xf32>
    %1 = tpu.concatenate %0, %0 in 1 : vector<8x32xf32>, vector<8x32xf32> -> vector<8x64xf32>
    %c0_1 = arith.constant 0 : index
    %c0_2 = arith.constant 0 : index
    %2 = vector.load %arg1[%c0_1, %c0_2] : memref<8x64xf32, #tpu.memory_space<vmem>>, vector<8x64xf32>
    %3 = arith.addf %2, %1 : vector<8x64xf32>
    %c0_3 = arith.constant 0 : index
    %c0_4 = arith.constant 0 : index
    %4 = vector.load %arg3[%c0_3, %c0_4] : memref<8x64xf32, #tpu.memory_space<vmem>>, vector<8x64xf32>
    tpu.vector_store %arg3[%c0_3, %c0_4], %3 {strides = array<i32>} : memref<8x64xf32, #tpu.memory_space<vmem>>, vector<8x64xf32>,
    return
  }
  func.func @transform_0(%arg0: i32) -> (i32, i32) {
    %c0_i32 = arith.constant 0 : i32
    %c0_i32_0 = arith.constant 0 : i32
    return %arg0, %c0_i32 : i32, i32
  }
  func.func @transform_1(%arg0: i32) -> (i32, i32) {
    %c0_i32 = arith.constant 0 : i32
    %c0_i32_0 = arith.constant 0 : i32
    return %arg0, %c0_i32 : i32, i32
  }
  func.func @transform_2(%arg0: i32) -> (i32, i32) {
    %c0_i32 = arith.constant 0 : i32
    %c0_i32_0 = arith.constant 0 : i32
    return %arg0, %c0_i32 : i32, i32
  }
}

</mosaic_0001>

<bundles_post_ra>
// kernel: _positional_encoding_impl.1
= control target key start
LH: loop header
LB: loop body
LE: loop exit
PB: predicated region body
PF: predicated region fallthrough
CT: control target
= control target key end

     0   :  { %s27_s11 = smov 32   ;;  %vm16_vm0 = vcmask 261120   ;;  %vm20_vm1 = vcmask 523264   ;;  %s52_s1 = inlined_call_operand.vmem [shape: f32[8,32], index: 1, kind: input, shape index: {}]   ;;  %s53_s0 = inlined_call_operand.vmem [shape: f32[8,64], index: 0, kind: input, shape index: {}, may-alias: {0,2}]   ;;  %s54_s2 = inlined_call_operand.vmem [shape: f32[8,64], index: 2, kind: output, shape index: {}, may-alias: {0,2}]  }
   0x1   :  { %v11_v0 = vld [vmem:[%s52_s1] sm:$0xff] }
   0x2   :  { %13 = vrot.lane.b32.xlu0 %v11_v0, %s27_s11  ;;  %v18_v1 = vld [vmem:[%s53_s0] sm:$0xff] }
  0x74   :  { %v14_v2 = vpop.permute.xlu0 %13 }
  0x75   :  { %v17_v3 = vsel %vm16_vm0, %v11_v0, %v14_v2 }
  0x76   :  { %v19_v4 = vadd.f32 %v18_v1, %v17_v3 }
  0x78   :  { %21 = vst.msk [vmem:[%s54_s2] sm:$0xff] %vm20_vm1, %v19_v4 }

</bundles_post_ra>
